<compile_context>
chip_gen: v7x
topology: tpu7x:2x2x1
jax: 0.10.0
libtpu: 0.0.40
codegen_flags: <defaults>
</compile_context>

<pallas_src>
import functools

import jax
import jax.numpy as jnp
from jax import lax
from jax.experimental import pallas as pl
from jax.experimental.pallas import tpu as pltpu


def _resample_kernel(coord_ref, img_ref, out_ref, *, H, W, C):
    """Bilinear warp of one (C, H, W) feature slab onto tn output pixels.

    coord_ref: (2, tn)   f32  warped sample coordinates [ix ; iy] for this tile
    img_ref  : (C*H, W)  f32  source features (lane axis = W)
    out_ref  : (C, tn)   input dtype
    """
    tn = coord_ref.shape[1]

    ix = coord_ref[0:1, :]                       # (1, tn)
    iy = coord_ref[1:2, :]

    x0 = jnp.floor(ix)
    y0 = jnp.floor(iy)
    x1 = x0 + 1.0
    y1 = y0 + 1.0
    wx1 = ix - x0
    wx0 = x1 - ix
    wy1 = iy - y0
    wy0 = y1 - iy

    def axis_onehot(c0, c1, w0, w1, size):
        # Weighted one-hot along one spatial axis -> (size, tn).
        # padding_mode='zeros': an out-of-bounds corner gets weight 0; validity
        # is checked on the UNCLAMPED coordinate.  Additive accumulation keeps
        # colliding clamped indices correct (the colliding corner has weight 0),
        # so do NOT fuse the two selects into a nested where.
        rows = lax.broadcasted_iota(jnp.int32, (size, 1), 0)        # (size, 1)
        v0 = (c0 >= 0.0) & (c0 <= size - 1.0)
        v1 = (c1 >= 0.0) & (c1 <= size - 1.0)
        i0 = jnp.clip(c0, 0.0, size - 1.0).astype(jnp.int32)        # (1, tn)
        i1 = jnp.clip(c1, 0.0, size - 1.0).astype(jnp.int32)
        g0 = jnp.where(v0, w0, 0.0)
        g1 = jnp.where(v1, w1, 0.0)
        return jnp.where(rows == i0, g0, 0.0) + jnp.where(rows == i1, g1, 0.0)

    mx = axis_onehot(x0, x1, wx0, wx1, W)        # (W, tn) f32, 2 nnz per column
    my = axis_onehot(y0, y1, wy0, wy1, H)        # (H, tn) f32, 2 nnz per column

    # x-gather on the MXU: (C*H, W) @ (W, tn) -> (C*H, tn), f32 accumulation.
    t = jnp.dot(img_ref[...], mx, preferred_element_type=jnp.float32)
    # y-gather: weight by My and reduce over H (VPU multiply + XLU sublane sum).
    t = t.reshape(C, H, tn)
    out = jnp.sum(t * my[None, :, :], axis=1)    # (C, tn) f32
    out_ref[...] = out.astype(out_ref.dtype)


def _vmem_capacity_bytes():
    try:
        info = pltpu.get_tpu_info()
        return int(getattr(info, "vmem_capacity_bytes", 64 * 1024 * 1024))
    except Exception:
        return 64 * 1024 * 1024


def _per_step_vmem_bytes(C, H, W, tn, out_bytes):
    """Approximate per-grid-step VMEM footprint (double-buffered operands +
    in-kernel temporaries), so tile selection budgets the real usage."""
    dbl = 2                                          # Pallas double-buffering
    coords = dbl * 2 * tn * 4
    img = dbl * C * H * W * 4
    out = dbl * C * tn * out_bytes
    onehots = 2 * (W + H) * tn * 4                   # Mx/My + compare temporaries
    inter = 2 * C * H * tn * 4                       # x-matmul result + My-weighted product
    return coords + img + out + onehots + inter


def _pick_lane_tile(C, H, W, P2_pad, out_bytes, budget_bytes, batch):
    """Largest lane tile (multiple of 128, dividing the padded pixel count)
    whose per-step footprint fits the VMEM budget.  For batch == 1 prefer an
    even tile count so both v7x TensorCores get work."""
    cands = [t for t in (2048, 1024, 512, 256, 128)
             if t <= P2_pad and P2_pad % t == 0]
    if not cands:
        cands = [P2_pad]
    feas = [t for t in cands
            if _per_step_vmem_bytes(C, H, W, t, out_bytes) <= budget_bytes]
    if not feas:
        feas = [cands[-1]]
    if batch == 1:
        for t in feas:
            n = P2_pad // t
            if n >= 2 and n % 2 == 0:
                return t
    return feas[0]


def resample2d(input1, input2, kernel_size=2, dilation=1, sigma=5.0):
    """Pallas equivalent of Resample2d.forward (NCHW, forward only).

    kernel_size / dilation / sigma kept for interface fidelity; the reference
    forward never uses them beyond a no-op sigma concat.
    """
    B, C, H, W = input1.shape
    _, two, H2, W2 = input2.shape
    assert two == 2
    P2 = H2 * W2

    # Warped sample coordinates: base pixel grid + flow, folded in the wrapper
    # (one tiny XLA add) so the kernel has a single coordinate DMA stream.  The
    # normalize->denormalize round trip of the reference is an identity for
    # align_corners=True (and a div-by-zero hazard for 1-pixel dims), so it is
    # dropped.
    xb = jnp.arange(W2, dtype=jnp.float32)[None, :]
    yb = jnp.arange(H2, dtype=jnp.float32)[:, None]
    ix = (xb + input2[:, 0].astype(jnp.float32)).reshape(B, 1, P2)
    iy = (yb + input2[:, 1].astype(jnp.float32)).reshape(B, 1, P2)
    coords = jnp.concatenate([ix, iy], axis=1)          # (B, 2, P2) f32

    # Pad the output-pixel axis to a lane-aligned multiple so output stores are
    # unmasked; padded columns get out-of-bounds coords -> exact zeros.
    lane_align = 512 if P2 > 512 else 128
    P2_pad = -(-P2 // lane_align) * lane_align
    if P2_pad != P2:
        coords = jnp.pad(coords, ((0, 0), (0, 0), (0, P2_pad - P2)),
                         constant_values=-2.0)

    # Source features flattened to (C*H, W): MXU M-dim = C*H, K-dim = W.
    img = input1.reshape(B, C * H, W).astype(jnp.float32)

    out_dtype = input1.dtype
    out_bytes = jnp.dtype(out_dtype).itemsize

    cap = _vmem_capacity_bytes()
    vmem_limit = max(32 * 1024 * 1024, min(int(0.75 * cap), 100 * 1024 * 1024))
    budget = int(0.6 * vmem_limit)

    tn = _pick_lane_tile(C, H, W, P2_pad, out_bytes, budget, B)
    n_tiles = P2_pad // tn

    kernel = functools.partial(_resample_kernel, H=H, W=W, C=C)

    cost = pl.CostEstimate(
        flops=int(2 * B * C * H * W * P2_pad + 2 * B * C * H * P2_pad),
        transcendentals=0,
        bytes_accessed=int(coords.size * 4 + img.size * 4
                           + B * C * P2_pad * out_bytes),
    )

    out_flat = pl.pallas_call(
        kernel,
        out_shape=jax.ShapeDtypeStruct((B, C, P2_pad), out_dtype),
        grid_spec=pltpu.PrefetchScalarGridSpec(
            num_scalar_prefetch=0,
            grid=(B, n_tiles),
            in_specs=[
                # warped coords, per (batch, output-pixel tile)
                pl.BlockSpec((None, 2, tn), lambda b, j: (b, 0, j)),
                # full source slab, per batch (block index constant across j
                # -> no re-DMA across the inner tile loop)
                pl.BlockSpec((None, C * H, W), lambda b, j: (b, 0, 0)),
            ],
            out_specs=pl.BlockSpec((None, C, tn), lambda b, j: (b, 0, j)),
        ),
        compiler_params=pltpu.CompilerParams(
            dimension_semantics=("parallel", "parallel"),
            vmem_limit_bytes=vmem_limit,
        ),
        cost_estimate=cost,
    )(coords, img)

    return out_flat[:, :, :P2].reshape(B, C, H2, W2)


def _reference_resample(input1, input2):
    """Pure-JAX f32 reference of grid_sample(bilinear, zeros, align_corners=True)."""
    B, C, H, W = input1.shape
    _, _, H2, W2 = input2.shape
    flow_x = input2[:, 0]
    flow_y = input2[:, 1]
    yb, xb = jnp.meshgrid(
        jnp.arange(H2, dtype=jnp.float32),
        jnp.arange(W2, dtype=jnp.float32),
        indexing="ij",
    )
    ix = xb[None] + flow_x
    iy = yb[None] + flow_y
    x0 = jnp.floor(ix)
    x1 = x0 + 1
    y0 = jnp.floor(iy)
    y1 = y0 + 1
    wx1, wx0 = ix - x0, x1 - ix
    wy1, wy0 = iy - y0, y1 - iy

    def gather(xc, yc):
        valid = (xc >= 0) & (xc <= W - 1) & (yc >= 0) & (yc <= H - 1)
        xi = jnp.clip(xc, 0, W - 1).astype(jnp.int32)
        yi = jnp.clip(yc, 0, H - 1).astype(jnp.int32)
        v = jax.vmap(lambda img, yy, xx: img[:, yy, xx])(input1, yi, xi)
        return v * valid[:, None].astype(input1.dtype)

    return (
        gather(x0, y0) * (wx0 * wy0)[:, None]
        + gather(x1, y0) * (wx1 * wy0)[:, None]
        + gather(x0, y1) * (wx0 * wy1)[:, None]
        + gather(x1, y1) * (wx1 * wy1)[:, None]
    )


if __name__ == "__main__":
    key = jax.random.PRNGKey(0)
    k1, k2 = jax.random.split(key)

    B, C, H, W = 2, 4, 16, 16
    input1 = jax.random.normal(k1, (B, C, H, W), dtype=jnp.float32)
    # flow of a few pixels magnitude so some samples land out of bounds too
    input2 = 3.0 * jax.random.normal(k2, (B, 2, H, W), dtype=jnp.float32)

    out = resample2d(input1, input2)
    out = jax.block_until_ready(out)

    ref = _reference_resample(input1, input2)
    assert out.shape == (B, C, H, W)
    # Tolerance covers possible reduced-precision MXU evaluation of the f32
    # matmul (default matmul precision); everything else is exact f32.
    max_err = float(jnp.max(jnp.abs(out - ref)))
    assert jnp.allclose(out, ref, atol=2e-2, rtol=2e-2), max_err

    print("KERNEL_OK")
</pallas_src>

<mosaic_0001>
module attributes {stable_mosaic.version = 11 : i64} {
  func.func @_resample_kernel(%arg0: i32, %arg1: i32, %arg2: memref<1x2x256xf32, #tpu.memory_space<vmem>>, %arg3: memref<1x64x16xf32, #tpu.memory_space<vmem>>, %arg4: memref<1x4x256xf32, #tpu.memory_space<vmem>>) attributes {dimension_semantics = [#tpu.dimension_semantics<parallel>, #tpu.dimension_semantics<parallel>], iteration_bounds = array<i64: 2, 1>, scalar_prefetch = 0 : i64, scratch_operands = 0 : i64, tpu.core_type = #tpu.core_type<tc>, window_params = [{transform_indices = @transform_0, window_bounds = array<i64: 1, 2, 256>}, {transform_indices = @transform_1, window_bounds = array<i64: 1, 64, 16>}, {transform_indices = @transform_2, window_bounds = array<i64: 1, 4, 256>}]} {
    %c0 = arith.constant 0 : index
    %c0_0 = arith.constant 0 : index
    %c0_1 = arith.constant 0 : index
    %0 = vector.load %arg2[%c0, %c0_0, %c0_1] : memref<1x2x256xf32, #tpu.memory_space<vmem>>, vector<1x1x256xf32>
    %1 = vector.shape_cast %0 : vector<1x1x256xf32> to vector<1x256xf32>
    %c0_2 = arith.constant 0 : index
    %c1 = arith.constant 1 : index
    %c0_3 = arith.constant 0 : index
    %2 = vector.load %arg2[%c0_2, %c1, %c0_3] : memref<1x2x256xf32, #tpu.memory_space<vmem>>, vector<1x1x256xf32>
    %3 = vector.shape_cast %2 : vector<1x1x256xf32> to vector<1x256xf32>
    %4 = math.floor %1 : vector<1x256xf32>
    %5 = math.floor %3 : vector<1x256xf32>
    %cst = arith.constant 1.000000e+00 : f32
    %6 = vector.broadcast %cst : f32 to vector<1x256xf32>
    %7 = arith.addf %4, %6 : vector<1x256xf32>
    %cst_4 = arith.constant 1.000000e+00 : f32
    %8 = vector.broadcast %cst_4 : f32 to vector<1x256xf32>
    %9 = arith.addf %5, %8 : vector<1x256xf32>
    %10 = arith.subf %1, %4 : vector<1x256xf32>
    %11 = arith.subf %7, %1 : vector<1x256xf32>
    %12 = arith.subf %3, %5 : vector<1x256xf32>
    %13 = arith.subf %9, %3 : vector<1x256xf32>
    %14 = tpu.iota {dimensions = array<i32: 0>} : vector<16x1xi32>
    %cst_5 = arith.constant 0.000000e+00 : f32
    %15 = vector.broadcast %cst_5 : f32 to vector<1x256xf32>
    %16 = arith.cmpf oge, %4, %15 : vector<1x256xf32>
    %cst_6 = arith.constant 1.500000e+01 : f32
    %17 = vector.broadcast %cst_6 : f32 to vector<1x256xf32>
    %18 = arith.cmpf ole, %4, %17 : vector<1x256xf32>
    %19 = arith.andi %16, %18 : vector<1x256xi1>
    %cst_7 = arith.constant 0.000000e+00 : f32
    %20 = vector.broadcast %cst_7 : f32 to vector<1x256xf32>
    %21 = arith.cmpf oge, %7, %20 : vector<1x256xf32>
    %cst_8 = arith.constant 1.500000e+01 : f32
    %22 = vector.broadcast %cst_8 : f32 to vector<1x256xf32>
    %23 = arith.cmpf ole, %7, %22 : vector<1x256xf32>
    %24 = arith.andi %21, %23 : vector<1x256xi1>
    %cst_9 = arith.constant 0.000000e+00 : f32
    %cst_10 = arith.constant 1.500000e+01 : f32
    %25 = vector.broadcast %cst_9 : f32 to vector<1x256xf32>
    %26 = arith.maximumf %25, %4 : vector<1x256xf32>
    %27 = vector.broadcast %cst_10 : f32 to vector<1x256xf32>
    %28 = arith.minimumf %27, %26 : vector<1x256xf32>
    %29 = arith.fptosi %28 : vector<1x256xf32> to vector<1x256xi32>
    %cst_11 = arith.constant 0.000000e+00 : f32
    %cst_12 = arith.constant 1.500000e+01 : f32
    %30 = vector.broadcast %cst_11 : f32 to vector<1x256xf32>
    %31 = arith.maximumf %30, %7 : vector<1x256xf32>
    %32 = vector.broadcast %cst_12 : f32 to vector<1x256xf32>
    %33 = arith.minimumf %32, %31 : vector<1x256xf32>
    %34 = arith.fptosi %33 : vector<1x256xf32> to vector<1x256xi32>
    %cst_13 = arith.constant 0.000000e+00 : f32
    %35 = vector.broadcast %cst_13 : f32 to vector<1x256xf32>
    %36 = arith.select %19, %11, %35 : vector<1x256xi1>, vector<1x256xf32>
    %cst_14 = arith.constant 0.000000e+00 : f32
    %37 = vector.broadcast %cst_14 : f32 to vector<1x256xf32>
    %38 = arith.select %24, %10, %37 : vector<1x256xi1>, vector<1x256xf32>
    %39 = vector.broadcast %14 : vector<16x1xi32> to vector<16x256xi32>
    %40 = vector.broadcast %29 : vector<1x256xi32> to vector<16x256xi32>
    %41 = arith.cmpi eq, %39, %40 : vector<16x256xi32>
    %cst_15 = arith.constant 0.000000e+00 : f32
    %42 = vector.shape_cast %36 : vector<1x256xf32> to vector<1x256xf32>
    %43 = vector.broadcast %42 : vector<1x256xf32> to vector<16x256xf32>
    %44 = vector.broadcast %cst_15 : f32 to vector<16x256xf32>
    %45 = arith.select %41, %43, %44 : vector<16x256xi1>, vector<16x256xf32>
    %46 = vector.broadcast %14 : vector<16x1xi32> to vector<16x256xi32>
    %47 = vector.broadcast %34 : vector<1x256xi32> to vector<16x256xi32>
    %48 = arith.cmpi eq, %46, %47 : vector<16x256xi32>
    %cst_16 = arith.constant 0.000000e+00 : f32
    %49 = vector.shape_cast %38 : vector<1x256xf32> to vector<1x256xf32>
    %50 = vector.broadcast %49 : vector<1x256xf32> to vector<16x256xf32>
    %51 = vector.broadcast %cst_16 : f32 to vector<16x256xf32>
    %52 = arith.select %48, %50, %51 : vector<16x256xi1>, vector<16x256xf32>
    %53 = arith.addf %45, %52 : vector<16x256xf32>
    %54 = tpu.iota {dimensions = array<i32: 0>} : vector<16x1xi32>
    %cst_17 = arith.constant 0.000000e+00 : f32
    %55 = vector.broadcast %cst_17 : f32 to vector<1x256xf32>
    %56 = arith.cmpf oge, %5, %55 : vector<1x256xf32>
    %cst_18 = arith.constant 1.500000e+01 : f32
    %57 = vector.broadcast %cst_18 : f32 to vector<1x256xf32>
    %58 = arith.cmpf ole, %5, %57 : vector<1x256xf32>
    %59 = arith.andi %56, %58 : vector<1x256xi1>
    %cst_19 = arith.constant 0.000000e+00 : f32
    %60 = vector.broadcast %cst_19 : f32 to vector<1x256xf32>
    %61 = arith.cmpf oge, %9, %60 : vector<1x256xf32>
    %cst_20 = arith.constant 1.500000e+01 : f32
    %62 = vector.broadcast %cst_20 : f32 to vector<1x256xf32>
    %63 = arith.cmpf ole, %9, %62 : vector<1x256xf32>
    %64 = arith.andi %61, %63 : vector<1x256xi1>
    %cst_21 = arith.constant 0.000000e+00 : f32
    %cst_22 = arith.constant 1.500000e+01 : f32
    %65 = vector.broadcast %cst_21 : f32 to vector<1x256xf32>
    %66 = arith.maximumf %65, %5 : vector<1x256xf32>
    %67 = vector.broadcast %cst_22 : f32 to vector<1x256xf32>
    %68 = arith.minimumf %67, %66 : vector<1x256xf32>
    %69 = arith.fptosi %68 : vector<1x256xf32> to vector<1x256xi32>
    %cst_23 = arith.constant 0.000000e+00 : f32
    %cst_24 = arith.constant 1.500000e+01 : f32
    %70 = vector.broadcast %cst_23 : f32 to vector<1x256xf32>
    %71 = arith.maximumf %70, %9 : vector<1x256xf32>
    %72 = vector.broadcast %cst_24 : f32 to vector<1x256xf32>
    %73 = arith.minimumf %72, %71 : vector<1x256xf32>
    %74 = arith.fptosi %73 : vector<1x256xf32> to vector<1x256xi32>
    %cst_25 = arith.constant 0.000000e+00 : f32
    %75 = vector.broadcast %cst_25 : f32 to vector<1x256xf32>
    %76 = arith.select %59, %13, %75 : vector<1x256xi1>, vector<1x256xf32>
    %cst_26 = arith.constant 0.000000e+00 : f32
    %77 = vector.broadcast %cst_26 : f32 to vector<1x256xf32>
    %78 = arith.select %64, %12, %77 : vector<1x256xi1>, vector<1x256xf32>
    %79 = vector.broadcast %54 : vector<16x1xi32> to vector<16x256xi32>
    %80 = vector.broadcast %69 : vector<1x256xi32> to vector<16x256xi32>
    %81 = arith.cmpi eq, %79, %80 : vector<16x256xi32>
    %cst_27 = arith.constant 0.000000e+00 : f32
    %82 = vector.shape_cast %76 : vector<1x256xf32> to vector<1x256xf32>
    %83 = vector.broadcast %82 : vector<1x256xf32> to vector<16x256xf32>
    %84 = vector.broadcast %cst_27 : f32 to vector<16x256xf32>
    %85 = arith.select %81, %83, %84 : vector<16x256xi1>, vector<16x256xf32>
    %86 = vector.broadcast %54 : vector<16x1xi32> to vector<16x256xi32>
    %87 = vector.broadcast %74 : vector<1x256xi32> to vector<16x256xi32>
    %88 = arith.cmpi eq, %86, %87 : vector<16x256xi32>
    %cst_28 = arith.constant 0.000000e+00 : f32
    %89 = vector.shape_cast %78 : vector<1x256xf32> to vector<1x256xf32>
    %90 = vector.broadcast %89 : vector<1x256xf32> to vector<16x256xf32>
    %91 = vector.broadcast %cst_28 : f32 to vector<16x256xf32>
    %92 = arith.select %88, %90, %91 : vector<16x256xi1>, vector<16x256xf32>
    %93 = arith.addf %85, %92 : vector<16x256xf32>
    %c0_29 = arith.constant 0 : index
    %c0_30 = arith.constant 0 : index
    %c0_31 = arith.constant 0 : index
    %94 = vector.load %arg3[%c0_29, %c0_30, %c0_31] : memref<1x64x16xf32, #tpu.memory_space<vmem>>, vector<1x64x16xf32>
    %95 = vector.shape_cast %94 : vector<1x64x16xf32> to vector<64x16xf32>
    %cst_32 = arith.constant dense<0.000000e+00> : vector<64x256xf32>
    %96 = tpu.matmul %95, %53, %cst_32 {dimension_numbers = #tpu.dot_dimension_numbers<[1], [0], [0], [1], [0, 0, 1, 1], [], []>} : vector<64x16xf32>, vector<16x256xf32>, vector<64x256xf32> -> vector<64x256xf32>
    %97 = vector.shape_cast %96 : vector<64x256xf32> to vector<4x16x256xf32>
    %98 = vector.shape_cast %93 : vector<16x256xf32> to vector<1x16x256xf32>
    %99 = vector.broadcast %98 : vector<1x16x256xf32> to vector<4x16x256xf32>
    %100 = arith.mulf %97, %99 : vector<4x16x256xf32>
    %cst_33 = arith.constant dense<0.000000e+00> : vector<4x256xf32>
    %101 = vector.multi_reduction <add>, %100, %cst_33 [1] : vector<4x16x256xf32> to vector<4x256xf32>
    %c0_34 = arith.constant 0 : index
    %c0_35 = arith.constant 0 : index
    %c0_36 = arith.constant 0 : index
    %102 = vector.load %arg4[%c0_34, %c0_35, %c0_36] : memref<1x4x256xf32, #tpu.memory_space<vmem>>, vector<1x4x256xf32>
    %103 = vector.shape_cast %102 : vector<1x4x256xf32> to vector<4x256xf32>
    %104 = vector.shape_cast %101 : vector<4x256xf32> to vector<1x4x256xf32>
    tpu.vector_store %arg4[%c0_34, %c0_35, %c0_36], %104 {strides = array<i32>} : memref<1x4x256xf32, #tpu.memory_space<vmem>>, vector<1x4x256xf32>,
    return
  }
  func.func @transform_0(%arg0: i32, %arg1: i32) -> (i32, i32, i32) {
    %c0_i32 = arith.constant 0 : i32
    %c0_i32_0 = arith.constant 0 : i32
    return %arg0, %c0_i32, %arg1 : i32, i32, i32
  }
  func.func @transform_1(%arg0: i32, %arg1: i32) -> (i32, i32, i32) {
    %c0_i32 = arith.constant 0 : i32
    %c0_i32_0 = arith.constant 0 : i32
    %c0_i32_1 = arith.constant 0 : i32
    return %arg0, %c0_i32, %c0_i32_0 : i32, i32, i32
  }
  func.func @transform_2(%arg0: i32, %arg1: i32) -> (i32, i32, i32) {
    %c0_i32 = arith.constant 0 : i32
    %c0_i32_0 = arith.constant 0 : i32
    return %arg0, %c0_i32, %arg1 : i32, i32, i32
  }
}

</mosaic_0001>

<bundles_post_ra>
// kernel: tpu_custom_call.1
= control target key start
LH: loop header
LB: loop body
LE: loop exit
PB: predicated region body
PF: predicated region fallthrough
CT: control target
= control target key end

     0   :  { %7 = vsyncpa [#allocation3], 0  ;;  %s1107_s0 = inlined_call_operand.vmem [shape: f32[2,2,256], index: 0, kind: input, shape index: {}]   ;;  %s1108_s1 = inlined_call_operand.vmem [shape: f32[2,64,16], index: 1, kind: input, shape index: {}]   ;;  %s1109_s2 = inlined_call_operand.hbm [shape: f32[2,4,256], index: 2, kind: output, shape index: {}]  }
   0x1   :  { %9 = vsyncpa [#allocation3 + $0x1], 0  ;;  %s897_s9 = smov 0   ;;  %s899_s10 = smov 0  }
   0x2   :  { %s901_s11 = smov 0   ;;  %s903_s12 = smov 0  }
   0x3   :  { %s905_s13 = smov 0   ;;  %s907_s14 = smov 0  }
   0x4 LB: > { %s703_s15 = sadd.s32 4294967295, %s878_s14   ;;  %s704_s16 = sadd.s32 4294967294, %s878_s14   ;;  %s878_s14 = sphi %s907_s14, %s15_s14   ;;  %s874_s13 = sphi %s905_s13, %s1116_s13   ;;  %s870_s12 = sphi %s903_s12, %s1115_s12   ;;  %s866_s11 = sphi %s901_s11, %s1114_s11   ;;  %s862_s10 = sphi %s899_s10, %s1113_s10   ;;  %s858_s9 = sphi %s897_s9, %s1112_s9  }
   0x5   : > { %s27_s17 = sadd.s32 1, %s874_s13  ;;  %s90_s18 = sadd.s32 1, %s866_s11 }
   0x6   : > { %p29_p0 = scmp.ge.s32.totalorder %s27_s17, 2  ;;  %p100_p1 = scmp.ne.s32.totalorder %s866_s11, %s862_s10 }
   0x7   : > { %p101_p2 = scmp.eq.s32.totalorder %s703_s15, 1  ;;  %p106_p3 = scmp.ne.s32.totalorder %s862_s10, %s858_s9 }
   0x8   : > { %s1118_s17 = smov (%p29_p0, %s27_s17), 0  ;;  %p107_p5 = scmp.eq.s32.totalorder %s704_s16, 1 }
   0x9   : > { %p937_p4 = por %p101_p2, %p100_p1  ;;  %s85_s20 = ssub.s32 %s874_s13, %s1118_s17 }
   0xa   : > { %p707_p6 = scmp.ge.s32.totalorder %s878_s14, 1  ;;  %p88_p7 = scmp.eq.s32.totalorder %s85_s20, 0 }
   0xb   : > { %p944_p8 = por %p107_p5, %p106_p3  ;;  %p146_p9 = scmp.lt.s32.totalorder %s878_s14, 3 }
   0xc   : > { %s950_s22 = scalar_select %p88_p7, %s866_s11, %s90_s18  }
   0xd   : > { %p147_p10 = pnand %p707_p6, %p146_p9 }
   0xe   : > { %p178_p11 = scmp.lt.s32.totalorder (!%p147_p10), %s870_s12, 1  ;;  %v204_v0 = vlaneseq (!%p147_p10)  ;;  %v880_v1 = vmov (!%p147_p10), 0.0   ;;  %s174_s4 = sand.u32 (!%p147_p10), 1, %s862_s10  }
   0xf   : > { %150 = sbr.rel (%p147_p10) target bundleno = 317 (0x13d), region = 28  ;;  %448 = vmatprep.mubr.f32.mxu0 (!%p147_p10), %v880_v1  ;;  %472 = vmatprep.mubr.f32.mxu1 (!%p147_p10), %v880_v1  ;;  %s708_s5 = sshll.u32 (!%p147_p10), %s174_s4, 3 }
  0x10   : > { %v959_v2 = vshrl.u32 (!%p147_p10), %v204_v0, 7  ;;  %s729_s6 = sshll.u32 (!%p147_p10), %s870_s12, 7  ;;  %s176_s7 = scalar_lea.vmem (!%p147_p10), [#allocation2], %s708_s5 }
  0x11   : > { %s615_s8 = sshll.u32 (!%p147_p10), %s176_s7, 4  ;;  %s1060_s18 = scalar_lea.hbm (!%p147_p10), %s1109_s2, %s729_s6  ;;  %s1062_s8 = int_to_ptr.vmem [resolvable:$true] %s615_s8 }
  0x12   : > { %v965_v7 = vsub.s32 (!%p147_p10), 1, %v959_v2  ;;  %v968_v8 = vsub.s32 (!%p147_p10), 0, %v959_v2  ;;  %v971_v21 = vadd.s32 (!%p147_p10), 8, %v959_v2  ;;  %s800_s20 = scalar_lea.vmem (!%p147_p10), %s1062_s8, 128 }
  0x13   : > { %p801_p12 = scmp.ne.s32.totalorder (!%p147_p10), %s1062_s8, %s800_s20 }
  0x15   : > { %p802_p13 = pnand (!%p147_p10), %p801_p12, %p937_p4 }
  0x16   : > { %s956_s23 = scalar_select %p178_p11, %s870_s12, 1 }
  0x17   : > { %s599_s12 = scalar_lea.sflag [#allocation3], %s174_s4  ;;  %p803_p0 = pneg %p802_p13 }
  0x18   : > { %s727_s24 = sshll.u32 %s956_s23, 2  ;;  %s728_s28 = sshll.u32 %s956_s23, 6 }
  0x19   : > { %s185_s27 = scalar_lea.vmem %s1107_s0, %s727_s24  ;;  %s1005_s3 = scalar_lea.vmem %s1108_s1, %s728_s28 }
  0x1a   : > { %v193_v3 = vld [vmem:[%s185_s27] ss:$2 sm:$0x3]  ;;  %v713_v4 = vld [vmem:[%s185_s27 + $0x1] ss:$2 sm:$0x3] }
  0x1b   : > { %v196_v5 = vfloor.f32 %v193_v3  ;;  %v197_v6 = vfloor.f32 %v713_v4  ;;  %v351_v62 = vld [vmem:[%s1005_s3] sm:$0xff]  ;;  %s881_s23 = smov [#allocation2]  }
  0x1c   : > { %v355_v63 = vld [vmem:[%s1005_s3 + $0x20] sm:$0xff]  ;;  %s804_s24 = sshll.u32 %s881_s23, 4  ;;  %s805_s24 = int_to_ptr.vmem [resolvable:$false] %s804_s24 }
  0x1d   : > { %v198_v9 = vadd.f32 1.0, %v196_v5  ;;  %v200_v10 = vsub.f32 %v193_v3, %v196_v5  ;;  %vm207_vm0 = vcmp.ge.f32.partialorder %v196_v5, 0.0  ;;  %vm208_vm1 = vcmp.le.f32.partialorder %v196_v5, 15.0  ;;  %s806_s25 = scalar_lea.vmem %s805_s24, 256  ;;  %p807_p1 = scmp.lt.s32.totalorder %s1062_s8, %s805_s24 }
  0x1e   : > { %vm209_vm2 = vmand %vm207_vm0, %vm208_vm1  ;;  %v213_v11 = vmax.f32 %v196_v5, 0.0  ;;  %v199_v12 = vadd.f32 1.0, %v197_v6  ;;  %v202_v13 = vsub.f32 %v713_v4, %v197_v6  ;;  %vm279_vm3 = vcmp.ge.f32.partialorder %v197_v6, 0.0  ;;  %v352_v5 = vld [vmem:[%s1005_s3 + $0x8] sm:$0xff]  ;;  %p808_p2 = scmp.lt.s32.totalorder %s806_s25, %s800_s20 }
  0x1f   : > { %v201_v14 = vsub.f32 %v198_v9, %v193_v3  ;;  %vm210_vm4 = vcmp.ge.f32.partialorder %v198_v9, 0.0  ;;  %vm211_vm5 = vcmp.le.f32.partialorder %v198_v9, 15.0  ;;  %v216_v15 = vmax.f32 %v198_v9, 0.0  ;;  %v357_v9 = vld [vmem:[%s1005_s3 + $0x30] sm:$0xff] }
  0x20   : > { %vm212_vm6 = vmand %vm210_vm4, %vm211_vm5  ;;  %v214_v16 = vmin.f32 %v213_v11, 15.0  ;;  %v203_v17 = vsub.f32 %v199_v12, %v713_v4  ;;  %vm280_vm7 = vcmp.le.f32.partialorder %v197_v6, 15.0  ;;  %vm282_vm8 = vcmp.ge.f32.partialorder %v199_v12, 0.0  ;;  %v358_v11 = vld [vmem:[%s1005_s3 + $0x38] sm:$0xff]  ;;  %p809_p3 = por %p808_p2, %p807_p1 }
  0x21   : > { %v217_v18 = vmin.f32 %v216_v15, 15.0  ;;  %v219_v19 = vsel %vm209_vm2, %v201_v14, 0.0  ;;  %v220_v20 = vsel %vm212_vm6, %v200_v10, 0.0  ;;  %vm281_vm9 = vmand %vm279_vm3, %vm280_vm7  ;;  %vm283_vm10 = vcmp.le.f32.partialorder %v199_v12, 15.0  ;;  %v354_v10 = vld [vmem:[%s1005_s3 + $0x18] sm:$0xff] }
  0x22   : > { %v736_v22 = vtrunc.f32 %v214_v16  ;;  %v241_v23 = vrot.slane %v219_v19, %v965_v7  ;;  %vm284_vm11 = vmand %vm282_vm8, %vm283_vm10  ;;  %v268_v25 = vrot.slane %v220_v20, %v965_v7  ;;  %v285_v26 = vmax.f32 %v197_v6, 0.0  ;;  %v356_v6 = vld [vmem:[%s1005_s3 + $0x28] sm:$0xff]  ;;  %p810_p5 = pnand %p809_p3, %p803_p0 }
  0x23   : > { %v738_v24 = vtrunc.f32 %v217_v18  ;;  %v288_v27 = vmax.f32 %v199_v12, 0.0  ;;  %v237_v29 = vrot.slane %v219_v19, %v968_v8  ;;  %v976_v30 = vsel %vm281_vm9, %v203_v17, 0.0 }
  0x24   : > { %v737_v28 = vcvt.f32.s32 %v736_v22  ;;  %v978_v31 = vsel %vm284_vm11, %v202_v13, 0.0  ;;  %v286_v33 = vmin.f32 %v285_v26, 15.0  ;;  %v982_v35 = vrot.slane %v976_v30, %v968_v8 }
  0x25   : > { %v739_v32 = vcvt.f32.s32 %v738_v24  ;;  %v289_v34 = vmin.f32 %v288_v27, 15.0  ;;  %v264_v38 = vrot.slane %v220_v20, %v968_v8  ;;  %v989_v39 = vrot.slane %v978_v31, %v968_v8 }
  0x26   : > { %v228_v36 = vrot.slane %v737_v28, %v965_v7  ;;  %v224_v37 = vrot.slane %v737_v28, %v968_v8  ;;  %v740_v42 = vtrunc.f32 %v286_v33  ;;  %vm359_vm6 = vcmask 130048  }
  0x27   : > { %v255_v40 = vrot.slane %v739_v32, %v965_v7  ;;  %v251_v41 = vrot.slane %v739_v32, %v968_v8  ;;  %v742_v43 = vtrunc.f32 %v289_v34  ;;  %v340_v17 = vrot.slane %v978_v31, %v965_v7 }
  0x28   : > { %vm230_vm12 = vcmp.eq.s32.totalorder %v959_v2, %v228_v36  ;;  %vm232_vm13 = vcmp.eq.s32.totalorder %v971_v21, %v228_v36  ;;  %vm229_vm14 = vcmp.eq.s32.totalorder %v959_v2, %v224_v37  ;;  %vm231_vm15 = vcmp.eq.s32.totalorder %v971_v21, %v224_v37 }
  0x29   : > { %v245_v44 = vsel %vm230_vm12, %v241_v23, 0.0  ;;  %v247_v45 = vsel %vm232_vm13, %v241_v23, 0.0  ;;  %vm257_vm0 = vcmp.eq.s32.totalorder %v959_v2, %v255_v40  ;;  %vm259_vm1 = vcmp.eq.s32.totalorder %v971_v21, %v255_v40 }
  0x2a   : > { %v272_v46 = vsel %vm257_vm0, %v268_v25, 0.0  ;;  %v274_v47 = vsel %vm259_vm1, %v268_v25, 0.0  ;;  %v244_v48 = vsel %vm229_vm14, %v237_v29, 0.0  ;;  %v246_v49 = vsel %vm231_vm15, %v237_v29, 0.0 }
  0x2b   : > { %v276_v50 = vadd.f32 %v272_v46, %v245_v44  ;;  %v278_v51 = vadd.f32 %v274_v47, %v247_v45  ;;  %vm256_vm2 = vcmp.eq.s32.totalorder %v959_v2, %v251_v41  ;;  %vm258_vm3 = vcmp.eq.s32.totalorder %v971_v21, %v251_v41 }
  0x2c   : > { %v271_v52 = vsel %vm256_vm2, %v264_v38, 0.0  ;;  %v273_v53 = vsel %vm258_vm3, %v264_v38, 0.0  ;;  %v741_v54 = vcvt.f32.s32 %v740_v42  ;;  %v743_v55 = vcvt.f32.s32 %v742_v43 }
  0x2d   : > { %v730_v56 = vpack.c.bf16 %v278_v51, %v276_v50  ;;  %v275_v57 = vadd.f32 %v271_v52, %v244_v48  ;;  %v277_v58 = vadd.f32 %v273_v53, %v246_v49  ;;  %vm582_vm13 = vcmask 1041409  }
  0x2e   : > { %v296_v59 = vrot.slane %v741_v54, %v968_v8  ;;  %v323_v60 = vrot.slane %v743_v55, %v968_v8  ;;  %v353_v8 = vld [vmem:[%s1005_s3 + $0x10] sm:$0xff]  ;;  %v300_v15 = vrot.slane %v741_v54, %v965_v7  ;;  %v327_v16 = vrot.slane %v743_v55, %v965_v7 }
  0x2f   : > { %731 = vmatprep.subr.bf16.mxu0 %v730_v56  ;;  %734 = vmatprep.subr.bf16.mxu1 %v730_v56  ;;  %v732_v61 = vpack.c.bf16 %v277_v58, %v275_v57  ;;  %vm584_vm14 = vcmask 1045509   ;;  %vm587_vm15 = vcmask 1042434   ;;  %vm589_vm0 = vcmask 1046534  }
  0x30   : > { %vm301_vm4 = vcmp.eq.s32.totalorder %v959_v2, %v296_v59  ;;  %vm328_vm5 = vcmp.eq.s32.totalorder %v959_v2, %v323_v60  ;;  %vm303_vm7 = vcmp.eq.s32.totalorder %v971_v21, %v296_v59  ;;  %vm330_vm8 = vcmp.eq.s32.totalorder %v971_v21, %v323_v60 }
  0x31   : > { %733 = vmatpush1.bf16.msra.mxu0 %v732_v61  ;;  %735 = vmatpush1.bf16.msra.mxu1 %v732_v61  ;;  %v316_v0 = vsel %vm301_vm4, %v982_v35, 0.0  ;;  %v343_v3 = vsel %vm328_vm5, %v989_v39, 0.0  ;;  %v318_v12 = vsel %vm303_vm7, %v982_v35, 0.0  ;;  %v345_v13 = vsel %vm330_vm8, %v989_v39, 0.0 }
  0x32   : > { %v1015_v4 = vadd.f32 %v343_v3, %v316_v0  ;;  %v349_v14 = vadd.f32 %v345_v13, %v318_v12  ;;  %vm302_vm9 = vcmp.eq.s32.totalorder %v959_v2, %v300_v15  ;;  %vm329_vm10 = vcmp.eq.s32.totalorder %v959_v2, %v327_v16 }
  0x33   : > { %v344_v19 = vsel %vm329_vm10, %v340_v17, 0.0  ;;  %vm304_vm11 = vcmp.eq.s32.totalorder %v971_v21, %v300_v15  ;;  %vm331_vm12 = vcmp.eq.s32.totalorder %v971_v21, %v327_v16  ;;  %vm592_vm1 = vcmask 1043459  }
  0x34   : > { %714 = vmatmul.mubr.msk.f32.vlgmr.msra.gmra.mrb[0].mxu0 %vm359_vm6, %v351_v62  ;;  %718 = vmatmul.mubr.msk.f32.vlgmr.msra.gmra.mrb[0].mxu1 %vm359_vm6, %v355_v63  ;;  %v346_v23 = vsel %vm331_vm12, %v340_v17, 0.0  ;;  %vm594_vm2 = vcmask 1047559  }
  0x35   : > { %454 = vmatprep.mubr.f32.mxu0 %v880_v1  ;;  %478 = vmatprep.mubr.f32.mxu1 %v880_v1 }
  0x38   : > { %715 = vmatmul.mubr.msk.f32.gmra.mrb[2].mxu0 %vm359_vm6, %v352_v5  ;;  %719 = vmatmul.mubr.msk.f32.gmra.mrb[2].mxu1 %vm359_vm6, %v356_v6 }
  0x39   : > { %460 = vmatprep.mubr.f32.mxu0 %v880_v1  ;;  %484 = vmatprep.mubr.f32.mxu1 %v880_v1 }
  0x3c   : > { %716 = vmatmul.mubr.msk.f32.gmra.mrb[4].mxu0 %vm359_vm6, %v353_v8  ;;  %720 = vmatmul.mubr.msk.f32.gmra.mrb[4].mxu1 %vm359_vm6, %v357_v9 }
  0x3d   : > { %466 = vmatprep.mubr.f32.mxu0 %v880_v1  ;;  %490 = vmatprep.mubr.f32.mxu1 %v880_v1  ;;  %v313_v1 = vrot.slane %v976_v30, %v965_v7 }
  0x3f   : > { %v317_v18 = vsel %vm302_vm9, %v313_v1, 0.0  ;;  %v319_v22 = vsel %vm304_vm11, %v313_v1, 0.0 }
  0x40   : > { %717 = vmatmul.mubr.msk.f32.gmra.mrb[6].mxu0 %vm359_vm6, %v354_v10  ;;  %721 = vmatmul.mubr.msk.f32.gmra.mrb[6].mxu1 %vm359_vm6, %v358_v11  ;;  %v348_v20 = vadd.f32 %v344_v19, %v317_v18  ;;  %v350_v2 = vadd.f32 %v346_v23, %v319_v22 }
 0x107   : > { %v450_v24 = vpop.f32.mrb[0].mxu0  ;;  %v474_v25 = vpop.f32.mrb[0].mxu1 }
 0x108   : > { %v497_v26 = vmul.f32 %v450_v24, %v1015_v4  ;;  %v452_v27 = vpop.f32.mrb[1].mxu0  ;;  %v505_v7 = vmul.f32 %v474_v25, %v1015_v4  ;;  %v476_v28 = vpop.f32.mrb[1].mxu1 }
 0x109   : > { %v498_v29 = vmul.f32 %v452_v27, %v348_v20  ;;  %v506_v30 = vmul.f32 %v476_v28, %v348_v20 }
 0x10b   : > { %v456_v31 = vpop.f32.mrb[2].mxu0  ;;  %v480_v32 = vpop.f32.mrb[2].mxu1 }
 0x10c   : > { %v499_v33 = vmul.f32 %v456_v31, %v349_v14  ;;  %v507_v34 = vmul.f32 %v480_v32, %v349_v14  ;;  %v458_v35 = vpop.f32.mrb[3].mxu0  ;;  %v482_v21 = vpop.f32.mrb[3].mxu1 }
 0x10d   : > { %v500_v36 = vmul.f32 %v458_v35, %v350_v2  ;;  %v508_v37 = vmul.f32 %v482_v21, %v350_v2 }
 0x10e   : > { %v513_v38 = vadd.f32 %v499_v33, %v497_v26  ;;  %v541_v39 = vadd.f32 %v507_v34, %v505_v7 }
 0x10f   : > { %v520_v40 = vadd.f32 %v500_v36, %v498_v29  ;;  %v548_v41 = vadd.f32 %v508_v37, %v506_v30  ;;  %v462_v42 = vpop.f32.mrb[4].mxu0  ;;  %v486_v43 = vpop.f32.mrb[4].mxu1 }
 0x110   : > { %v514_v44 = vrot.slane %v513_v38, 4  ;;  %v542_v45 = vrot.slane %v541_v39, 4  ;;  %v501_v46 = vmul.f32 %v462_v42, %v1015_v4  ;;  %v464_v47 = vpop.f32.mrb[5].mxu0  ;;  %v509_v48 = vmul.f32 %v486_v43, %v1015_v4  ;;  %v488_v49 = vpop.f32.mrb[5].mxu1 }
 0x111   : > { %v521_v50 = vrot.slane %v520_v40, 4  ;;  %v549_v51 = vrot.slane %v548_v41, 4  ;;  %v502_v52 = vmul.f32 %v464_v47, %v348_v20  ;;  %v510_v53 = vmul.f32 %v488_v49, %v348_v20 }
 0x112   : > { %v515_v54 = vadd.f32 %v514_v44, %v513_v38  ;;  %v543_v55 = vadd.f32 %v542_v45, %v541_v39 }
 0x113   : > { %v522_v56 = vadd.f32 %v521_v50, %v520_v40  ;;  %v550_v57 = vadd.f32 %v549_v51, %v548_v41  ;;  %v468_v58 = vpop.f32.mrb[6].mxu0  ;;  %v492_v59 = vpop.f32.mrb[6].mxu1 }
 0x114   : > { %v516_v60 = vrot.slane %v515_v54, 2  ;;  %v544_v61 = vrot.slane %v543_v55, 2  ;;  %v503_v62 = vmul.f32 %v468_v58, %v349_v14  ;;  %v511_v63 = vmul.f32 %v492_v59, %v349_v14  ;;  %v470_v0 = vpop.f32.mrb[7].mxu0  ;;  %v494_v3 = vpop.f32.mrb[7].mxu1 }
 0x115   : > { %v523_v5 = vrot.slane %v522_v56, 2  ;;  %v551_v6 = vrot.slane %v550_v57, 2  ;;  %v504_v4 = vmul.f32 %v470_v0, %v350_v2  ;;  %v512_v8 = vmul.f32 %v494_v3, %v350_v2 }
 0x116   : > { %v517_v9 = vadd.f32 %v516_v60, %v515_v54  ;;  %v545_v10 = vadd.f32 %v544_v61, %v543_v55  ;;  %v527_v11 = vadd.f32 %v503_v62, %v501_v46  ;;  %v555_v12 = vadd.f32 %v511_v63, %v509_v48 }
 0x117   : > { %v524_v13 = vadd.f32 %v523_v5, %v522_v56  ;;  %v552_v15 = vadd.f32 %v551_v6, %v550_v57  ;;  %v534_v16 = vadd.f32 %v504_v4, %v502_v52  ;;  %v562_v1 = vadd.f32 %v512_v8, %v510_v53 }
 0x118   : > { %v518_v17 = vrot.slane %v517_v9, 1  ;;  %v546_v18 = vrot.slane %v545_v10, 1  ;;  %v528_v19 = vrot.slane %v527_v11, 4  ;;  %v556_v20 = vrot.slane %v555_v12, 4 }
 0x119   : > { %v525_v22 = vrot.slane %v524_v13, 1  ;;  %v553_v14 = vrot.slane %v552_v15, 1  ;;  %v535_v23 = vrot.slane %v534_v16, 4  ;;  %v563_v24 = vrot.slane %v562_v1, 4 }
 0x11a   : > { %v519_v25 = vadd.f32 %v518_v17, %v517_v9  ;;  %v547_v26 = vadd.f32 %v546_v18, %v545_v10  ;;  %v529_v27 = vadd.f32 %v528_v19, %v527_v11  ;;  %v557_v7 = vadd.f32 %v556_v20, %v555_v12 }
 0x11b   : > { %v526_v28 = vadd.f32 %v525_v22, %v524_v13  ;;  %v554_v29 = vadd.f32 %v553_v14, %v552_v15  ;;  %v536_v30 = vadd.f32 %v535_v23, %v534_v16  ;;  %v564_v2 = vadd.f32 %v563_v24, %v562_v1 }
 0x11c   : > { %v530_v31 = vrot.slane %v529_v27, 2  ;;  %v558_v32 = vrot.slane %v557_v7, 2 }
 0x11d   : > { %v577_v33 = vcombine.low %v519_v25, %v526_v28  ;;  %v579_v34 = vcombine.low %v547_v26, %v554_v29  ;;  %v537_v35 = vrot.slane %v536_v30, 2  ;;  %v565_v21 = vrot.slane %v564_v2, 2 }
 0x11e   : > { %v531_v36 = vadd.f32 %v530_v31, %v529_v27  ;;  %v559_v37 = vadd.f32 %v558_v32, %v557_v7 }
 0x11f   : > { %v538_v38 = vadd.f32 %v537_v35, %v536_v30  ;;  %v566_v39 = vadd.f32 %v565_v21, %v564_v2  ;;  %v586_v51 = vrot.slane %v579_v34, 6 }
 0x120   : > { %v532_v40 = vrot.slane %v531_v36, 1  ;;  %v560_v41 = vrot.slane %v559_v37, 1 }
 0x121   : > { %v539_v42 = vrot.slane %v538_v38, 1  ;;  %v567_v43 = vrot.slane %v566_v39, 1 }
 0x122   : > { %v533_v44 = vadd.f32 %v532_v40, %v531_v36  ;;  %v561_v45 = vadd.f32 %v560_v41, %v559_v37 }
 0x123   : > { %v540_v46 = vadd.f32 %v539_v42, %v538_v38  ;;  %v568_v47 = vadd.f32 %v567_v43, %v566_v39 }
 0x125   : > { %v578_v48 = vcombine.low %v533_v44, %v540_v46  ;;  %v580_v49 = vcombine.low %v561_v45, %v568_v47 }
 0x127   : > { %v581_v50 = vrot.slane %v578_v48, 7  ;;  %v591_v55 = vrot.slane %v580_v49, 5 }
 0x129   : > { %v583_v52 = vsel %vm582_vm13, %v581_v50, %v577_v33 }
 0x12a   : > { %v585_v53 = vsel %vm584_vm14, %v581_v50, %v583_v52 }
 0x12b   : > { %v588_v54 = vsel %vm587_vm15, %v586_v51, %v585_v53 }
 0x12c   : > { %v590_v56 = vsel %vm589_vm0, %v586_v51, %v588_v54 }
 0x12d   : > { %v593_v57 = vsel %vm592_vm1, %v591_v55, %v590_v56 }
 0x12e   : > { %v595_v58 = vsel %vm594_vm2, %v591_v55, %v593_v57 }
 0x12f   : > { %597 = vst [vmem:[%s176_s7] sm:$0xff] %v595_v58 }
 0x130   : > { %813 = shalt.err (!%p810_p5)
}
 0x131   : > { %s814_s26 = scalar_lea.hbm %s1060_s18, 128  ;;  %s818_s29 = scalar_lea.hbm %s1109_s2, 256 }
 0x132   : > { %p815_p6 = scmp.ne.s32.totalorder %s1060_s18, %s814_s26  ;;  %p819_p10 = scmp.lt.u32.totalorder %s1060_s18, %s1109_s2 }
 0x133   : > { %p820_p11 = scmp.lt.u32.totalorder %s818_s29, %s814_s26  ;;  %p822_p13 = scmp.lt.u32.totalorder %s814_s26, %s1060_s18 }
 0x134   : > { %p816_p7 = pnand %p815_p6, %p937_p4 }
 0x135   : > { %p821_p12 = por %p820_p11, %p819_p10 }
 0x136   : > { %p817_p9 = pneg %p816_p7 }
 0x137   : > { %p823_p0 = por %p822_p13, %p821_p12 }
 0x139   : > { %p824_p1 = pnand %p823_p0, %p817_p9 }
 0x13b   : > { %827 = shalt.err (!%p824_p1)
}
 0x13c   : > { %744 = dma.vmem_to_hbm [thread:$0]  (%p937_p4), %s1062_s8, 128, %s1060_s18, %s599_s12  }
 0x13d PF: > { %p750_p2 = scmp.ge.s32.totalorder %s878_s14, 2  ;;  %s627_s4 = sand.u32 1, %s858_s9  }
 0x13e   : > { %s628_s5 = scalar_lea.sflag [#allocation3], %s627_s4 }
 0x13f   : > { %p747_p3 = pnand %p750_p2, %p944_p8 }
 0x141   : > { %853 = dma.done.wait (!%p747_p3), %s628_s5, 128  }
 0x142   : > { %855 = vsyncadd (!%p747_p3), %s628_s5, 4294967168  ;;  %s15_s14 = sadd.s32 1, %s878_s14   ;;  %s1112_s9 = smov %s862_s10 }
 0x143   : > { %p12_p5 = scmp.ge.s32.totalorder %s15_s14, 4   ;;  %s1113_s10 = smov %s866_s11 }
 0x144   : > { %s1114_s11 = smov %s950_s22  ;;  %s1115_s12 = smov %s874_s13 }
 0x145   : > { %s1116_s13 = smov %s1118_s17  ;;  %14 = sbr.rel (!%p12_p5) target bundleno = 4 (0x4), region = 67 }
 0x14c   :  { %633 = vsyncpa [#allocation3], 1 }
 0x14d   :  { %635 = vsyncpa [#allocation3 + $0x1], 1 }

</bundles_post_ra>
